<compile_context>
chip_gen: v7x
topology: tpu7x:2x2x1
jax: 0.10.0
libtpu: 0.0.40
codegen_flags: <defaults>
</compile_context>

<pallas_src>
import functools

import jax
import jax.numpy as jnp
from jax.experimental import pallas as pl
from jax.experimental.pallas import tpu as pltpu

D_IN = 784           # 28*28 flattened MNIST image (no feature padding)
H = 128              # hidden width
C_RAW = 10           # number of classes
C_PAD = 128          # lane-padded head width (unmasked full-lane stores)


def _round_up(x, m):
    return (x + m - 1) // m * m


def _cdiv(a, b):
    return -(-a // b)


# ----------------------------- Pallas kernel -------------------------------
def mlp_kernel(x_ref, w1_ref, b1_ref, w2_ref, b2_ref, o_ref):
    # x_ref : (TB, 784) bf16     w1_ref: (784, 128) bf16   b1_ref: (1, 128) f32
    # w2_ref: (128, 128) bf16    b2_ref: (1, 128) f32      o_ref : (TB, 128) bf16
    b1 = b1_ref[...]                                   # hoisted bias reads
    b2 = b2_ref[...]
    h = jnp.dot(x_ref[...], w1_ref[...],
                preferred_element_type=jnp.float32) + b1
    h = jnp.maximum(h, 0.0)                            # ReLU on the VPU
    logits = jnp.dot(h.astype(w2_ref.dtype), w2_ref[...],
                     preferred_element_type=jnp.float32) + b2
    o_ref[...] = logits.astype(o_ref.dtype)            # bf16 store, 128 lanes


# ------------------------------ Wrapper ------------------------------------
def pack_params(w1, b1, w2, b2):
    """Cast / pad PyTorch-shaped params once: (784,128)/(128,)/(128,10)/(10,)."""
    w1p = w1.astype(jnp.bfloat16)                                   # (784, 128)
    b1p = b1.reshape(1, H).astype(jnp.float32)                      # (1, 128)
    w2p = jnp.zeros((H, C_PAD), jnp.bfloat16).at[:, :C_RAW].set(
        w2.astype(jnp.bfloat16))                                    # (128, 128)
    b2p = jnp.zeros((1, C_PAD), jnp.float32).at[0, :C_RAW].set(
        b2.astype(jnp.float32))                                     # (1, 128)
    return w1p, b1p, w2p, b2p


def _choose_batch_tile(B, tb):
    """Pick a batch tile that (a) is a multiple of 16 (bf16 sublane pack),
    (b) wastes little batch padding for awkward B, and (c) gives >=2 grid
    steps when the batch is big enough, so dual-TC chips (v7x) split it."""
    n_tiles = max(_cdiv(B, tb), 1)
    if n_tiles == 1 and B > 16:
        n_tiles = 2
    tb_eff = _round_up(_cdiv(B, n_tiles), 16)
    b_pad = _round_up(B, tb_eff)
    return tb_eff, b_pad


@functools.partial(jax.jit, static_argnames=("tb",))
def digit_recognizer_forward(x_nchw, w1p, b1p, w2p, b2p, tb=1024):
    """Forward pass. x_nchw: (B, 1, 28, 28) float -> logits (B, 10) float32."""
    B = x_nchw.shape[0]
    tb_eff, b_pad = _choose_batch_tile(B, tb)

    # Flatten + bf16 cast (+ batch-row pad only when needed).  With
    # allow_input_fusion on this operand XLA can fuse these prep ops into the
    # pallas_call instead of materializing the full tensor in HBM first.
    x_flat = x_nchw.reshape(B, -1).astype(jnp.bfloat16)             # (B, 784)
    if b_pad != B:
        x_flat = jnp.pad(x_flat, ((0, b_pad - B), (0, 0)))

    grid = (b_pad // tb_eff,)
    cost = pl.CostEstimate(
        flops=2 * b_pad * (D_IN * H + H * C_PAD),
        transcendentals=0,
        bytes_accessed=(b_pad * D_IN * 2 + D_IN * H * 2 + H * C_PAD * 2
                        + H * 4 + C_PAD * 4 + b_pad * C_PAD * 2),
    )

    out_pad = pl.pallas_call(
        mlp_kernel,
        out_shape=jax.ShapeDtypeStruct((b_pad, C_PAD), jnp.bfloat16),
        grid=grid,
        in_specs=[
            pl.BlockSpec((tb_eff, D_IN), lambda i: (i, 0)),   # x streams
            pl.BlockSpec((D_IN, H), lambda i: (0, 0)),        # weights resident
            pl.BlockSpec((1, H), lambda i: (0, 0)),
            pl.BlockSpec((H, C_PAD), lambda i: (0, 0)),
            pl.BlockSpec((1, C_PAD), lambda i: (0, 0)),
        ],
        out_specs=pl.BlockSpec((tb_eff, C_PAD), lambda i: (i, 0)),
        compiler_params=pltpu.CompilerParams(
            dimension_semantics=("parallel",),
            vmem_limit_bytes=32 << 20,
            allow_input_fusion=[True, False, False, False, False],
        ),
        cost_estimate=cost,
    )(x_flat, w1p, b1p, w2p, b2p)

    return out_pad[:B, :C_RAW].astype(jnp.float32)


# --------------------------- Parameter setup -------------------------------
def init_params(key, in_dim=D_IN, hidden=H, num_classes=C_RAW):
    """Deterministic synthetic params (PyTorch nn.Linear shapes, transposed)."""
    k1, k2, k3, k4 = jax.random.split(key, 4)
    w1 = jax.random.normal(k1, (in_dim, hidden), jnp.float32) / jnp.sqrt(in_dim)
    b1 = jax.random.normal(k2, (hidden,), jnp.float32) * 0.01
    w2 = jax.random.normal(k3, (hidden, num_classes), jnp.float32) / jnp.sqrt(hidden)
    b2 = jax.random.normal(k4, (num_classes,), jnp.float32) * 0.01
    return w1, b1, w2, b2


# TODO(synk): normalize_image (data-dependent bounding-box crop/recenter) has
# dynamic shapes and no clean Pallas equivalent; it is host-side preprocessing.

if __name__ == "__main__":
    key = jax.random.PRNGKey(0)
    kx, kp = jax.random.split(key)

    B = 8
    x = jax.random.uniform(kx, (B, 1, 28, 28), jnp.float32)   # NCHW, like torch
    w1, b1, w2, b2 = init_params(kp)
    w1p, b1p, w2p, b2p = pack_params(w1, b1, w2, b2)

    logits = digit_recognizer_forward(x, w1p, b1p, w2p, b2p)
    logits = jax.block_until_ready(logits)

    # Reference with the same bf16-operand / f32-accumulate / bf16-store semantics.
    xf = x.reshape(B, -1).astype(jnp.bfloat16)
    h_ref = jnp.dot(xf, w1.astype(jnp.bfloat16),
                    preferred_element_type=jnp.float32) + b1
    h_ref = jnp.maximum(h_ref, 0.0)
    ref = jnp.dot(h_ref.astype(jnp.bfloat16), w2.astype(jnp.bfloat16),
                  preferred_element_type=jnp.float32) + b2
    ref = ref.astype(jnp.bfloat16).astype(jnp.float32)

    assert logits.shape == (B, C_RAW)
    assert jnp.allclose(logits, ref, atol=2e-2, rtol=2e-2), (
        float(jnp.max(jnp.abs(logits - ref))))

    print("KERNEL_OK")
</pallas_src>

<mosaic_0001>
module attributes {stable_mosaic.version = 11 : i64} {
  func.func @mlp_kernel(%arg0: i32, %arg1: memref<16x784xbf16, #tpu.memory_space<vmem>>, %arg2: memref<784x128xbf16, #tpu.memory_space<vmem>>, %arg3: memref<1x128xf32, #tpu.memory_space<vmem>>, %arg4: memref<128x128xbf16, #tpu.memory_space<vmem>>, %arg5: memref<1x128xf32, #tpu.memory_space<vmem>>, %arg6: memref<16x128xbf16, #tpu.memory_space<vmem>>) attributes {dimension_semantics = [#tpu.dimension_semantics<parallel>], iteration_bounds = array<i64: 1>, scalar_prefetch = 0 : i64, scratch_operands = 0 : i64, tpu.core_type = #tpu.core_type<tc>, window_params = [{transform_indices = @transform_0, window_bounds = array<i64: 16, 784>}, {pipeline_mode = #tpu.pipeline_mode<synchronous>, transform_indices = @transform_1, window_bounds = array<i64: 784, 128>}, {pipeline_mode = #tpu.pipeline_mode<synchronous>, transform_indices = @transform_2, window_bounds = array<i64: 1, 128>}, {pipeline_mode = #tpu.pipeline_mode<synchronous>, transform_indices = @transform_3, window_bounds = array<i64: 128, 128>}, {pipeline_mode = #tpu.pipeline_mode<synchronous>, transform_indices = @transform_4, window_bounds = array<i64: 1, 128>}, {transform_indices = @transform_5, window_bounds = array<i64: 16, 128>}]} {
    %c0 = arith.constant 0 : index
    %c0_0 = arith.constant 0 : index
    %0 = vector.load %arg3[%c0, %c0_0] : memref<1x128xf32, #tpu.memory_space<vmem>>, vector<1x128xf32>
    %c0_1 = arith.constant 0 : index
    %c0_2 = arith.constant 0 : index
    %1 = vector.load %arg5[%c0_1, %c0_2] : memref<1x128xf32, #tpu.memory_space<vmem>>, vector<1x128xf32>
    %c0_3 = arith.constant 0 : index
    %c0_4 = arith.constant 0 : index
    %2 = vector.load %arg1[%c0_3, %c0_4] : memref<16x784xbf16, #tpu.memory_space<vmem>>, vector<16x784xbf16>
    %c0_5 = arith.constant 0 : index
    %c0_6 = arith.constant 0 : index
    %3 = vector.load %arg2[%c0_5, %c0_6] : memref<784x128xbf16, #tpu.memory_space<vmem>>, vector<784x128xbf16>
    %cst = arith.constant dense<0.000000e+00> : vector<16x128xf32>
    %4 = tpu.matmul %2, %3, %cst {dimension_numbers = #tpu.dot_dimension_numbers<[1], [0], [0], [1], [0, 0, 1, 1], [], []>} : vector<16x784xbf16>, vector<784x128xbf16>, vector<16x128xf32> -> vector<16x128xf32>
    %5 = vector.broadcast %0 : vector<1x128xf32> to vector<16x128xf32>
    %6 = arith.addf %4, %5 : vector<16x128xf32>
    %cst_7 = arith.constant 0.000000e+00 : f32
    %7 = vector.broadcast %cst_7 : f32 to vector<16x128xf32>
    %8 = arith.maximumf %6, %7 : vector<16x128xf32>
    %9 = arith.truncf %8 : vector<16x128xf32> to vector<16x128xbf16>
    %c0_8 = arith.constant 0 : index
    %c0_9 = arith.constant 0 : index
    %10 = vector.load %arg4[%c0_8, %c0_9] : memref<128x128xbf16, #tpu.memory_space<vmem>>, vector<128x128xbf16>
    %cst_10 = arith.constant dense<0.000000e+00> : vector<16x128xf32>
    %11 = tpu.matmul %9, %10, %cst_10 {dimension_numbers = #tpu.dot_dimension_numbers<[1], [0], [0], [1], [0, 0, 1, 1], [], []>} : vector<16x128xbf16>, vector<128x128xbf16>, vector<16x128xf32> -> vector<16x128xf32>
    %12 = vector.broadcast %1 : vector<1x128xf32> to vector<16x128xf32>
    %13 = arith.addf %11, %12 : vector<16x128xf32>
    %14 = arith.truncf %13 : vector<16x128xf32> to vector<16x128xbf16>
    %c0_11 = arith.constant 0 : index
    %c0_12 = arith.constant 0 : index
    %15 = vector.load %arg6[%c0_11, %c0_12] : memref<16x128xbf16, #tpu.memory_space<vmem>>, vector<16x128xbf16>
    tpu.vector_store %arg6[%c0_11, %c0_12], %14 {strides = array<i32>} : memref<16x128xbf16, #tpu.memory_space<vmem>>, vector<16x128xbf16>,
    return
  }
  func.func @transform_0(%arg0: i32) -> (i32, i32) {
    %c0_i32 = arith.constant 0 : i32
    %c0_i32_0 = arith.constant 0 : i32
    return %arg0, %c0_i32 : i32, i32
  }
  func.func @transform_1(%arg0: i32) -> (i32, i32) {
    %c0_i32 = arith.constant 0 : i32
    %c0_i32_0 = arith.constant 0 : i32
    %c0_i32_1 = arith.constant 0 : i32
    return %c0_i32, %c0_i32_0 : i32, i32
  }
  func.func @transform_2(%arg0: i32) -> (i32, i32) {
    %c0_i32 = arith.constant 0 : i32
    %c0_i32_0 = arith.constant 0 : i32
    %c0_i32_1 = arith.constant 0 : i32
    return %c0_i32, %c0_i32_0 : i32, i32
  }
  func.func @transform_3(%arg0: i32) -> (i32, i32) {
    %c0_i32 = arith.constant 0 : i32
    %c0_i32_0 = arith.constant 0 : i32
    %c0_i32_1 = arith.constant 0 : i32
    return %c0_i32, %c0_i32_0 : i32, i32
  }
  func.func @transform_4(%arg0: i32) -> (i32, i32) {
    %c0_i32 = arith.constant 0 : i32
    %c0_i32_0 = arith.constant 0 : i32
    %c0_i32_1 = arith.constant 0 : i32
    return %c0_i32, %c0_i32_0 : i32, i32
  }
  func.func @transform_5(%arg0: i32) -> (i32, i32) {
    %c0_i32 = arith.constant 0 : i32
    %c0_i32_0 = arith.constant 0 : i32
    return %arg0, %c0_i32 : i32, i32
  }
}

</mosaic_0001>

<bundles_post_ra>
// kernel: digit_recognizer_forward.2
= control target key start
LH: loop header
LB: loop body
LE: loop exit
PB: predicated region body
PF: predicated region fallthrough
CT: control target
= control target key end

     0   :  { %s1479_s0 = inlined_call_operand.vmem [shape: bf16[784,128], index: 0, kind: input, shape index: {}]   ;;  %s1480_s1 = inlined_call_operand.vmem [shape: f32[1,128], index: 1, kind: input, shape index: {}]   ;;  %s1481_s2 = inlined_call_operand.vmem [shape: bf16[128,128], index: 2, kind: input, shape index: {}]   ;;  %s1482_s3 = inlined_call_operand.vmem [shape: f32[1,128], index: 3, kind: input, shape index: {}]   ;;  %s1483_s4 = inlined_call_operand.vmem [shape: bf16[8,784], index: 4, kind: input, shape index: {}]   ;;  %s1484_s5 = inlined_call_operand.<no memory space> [shape: bf16[], index: 5, kind: input, shape index: {}]   ;;  %s1485_s6 = inlined_call_operand.vmem [shape: bf16[16,128], index: 6, kind: output, shape index: {}]  }
   0x1   :  { %v11_v0 = vstv %s1484_s5 }
   0x2   :  { %v1268_v1 = vunpack.i.l.bf16 %v11_v0 }
   0x3   :  { %v1165_v2 = vld [vmem:[%s1479_s0 + $0x40] sm:$0xff]   ;;  %v1169_v7 = vld [vmem:[%s1479_s0 + $0x48] sm:$0xff]   ;;  %v1173_v11 = vld [vmem:[%s1479_s0 + $0x50] sm:$0xff]   ;;  %v169_v23 = vlaneseq  ;;  %v1228_v46 = vmov 0.0   ;;  %vm1229_vm1 = vmmov 0   ;;  %vm650_vm2 = vcmask 130048  }
   0x4   :  { %v1041_v3 = vpack.c.bf16 %v1268_v1, %v1268_v1  ;;  %v1166_v4 = vld [vmem:[%s1479_s0] sm:$0xff]   ;;  %1060 = vmatprep.subr.bf16.mxu0 %v1165_v2  ;;  %v1170_v8 = vld [vmem:[%s1479_s0 + $0x8] sm:$0xff]   ;;  %v1174_v12 = vld [vmem:[%s1479_s0 + $0x10] sm:$0xff]  }
   0x5   :  { %v1167_v5 = vld [vmem:[%s1479_s0 + $0xc0] sm:$0xff]   ;;  %1061 = vmatpush3.bf16.msra.mxu0 %v1166_v4  ;;  %v1171_v9 = vld [vmem:[%s1479_s0 + $0xc8] sm:$0xff]   ;;  %v1175_v13 = vld [vmem:[%s1479_s0 + $0xd0] sm:$0xff]   ;;  %v170_v28 = vand.u32 127, %v169_v23 }
   0x6   :  { %1042 = vst [vmem:[#allocation7 + $0x20] sm:$0xff] %v1041_v3   ;;  %1047 = vst [vmem:[#allocation7 + $0x28] sm:$0xff] %v1041_v3   ;;  %v1168_v6 = vld [vmem:[%s1479_s0 + $0x80] sm:$0xff]   ;;  %1082 = vmatprep.subr.bf16.mxu1 %v1167_v5  ;;  %1062 = vmatprep.subr.bf16.mxu0 %v1169_v7  ;;  %v1172_v10 = vld [vmem:[%s1479_s0 + $0x88] sm:$0xff]  }
   0x7   :  { %1052 = vst [vmem:[#allocation7 + $0x30] sm:$0xff] %v1041_v3   ;;  %1083 = vmatpush3.bf16.msra.mxu1 %v1168_v6  ;;  %v1176_v14 = vld [vmem:[%s1479_s0 + $0x90] sm:$0xff]   ;;  %v1177_v15 = vld [vmem:[%s1479_s0 + $0x58] sm:$0xff]   ;;  %v1181_v19 = vld [vmem:[%s1479_s0 + $0x60] sm:$0xff]   ;;  %v171_v33 = vadd.s32 768, %v170_v28 }
   0x8   :  { %1084 = vmatprep.subr.bf16.mxu1 %v1171_v9  ;;  %v1178_v16 = vld [vmem:[%s1479_s0 + $0x18] sm:$0xff]   ;;  %v1182_v20 = vld [vmem:[%s1479_s0 + $0x20] sm:$0xff]   ;;  %v1185_v24 = vld [vmem:[%s1479_s0 + $0x68] sm:$0xff]  }
   0x9   :  { %1063 = vmatpush3.bf16.msra.mxu0 %v1170_v8  ;;  %v1179_v17 = vld [vmem:[%s1479_s0 + $0xd8] sm:$0xff]   ;;  %v1183_v21 = vld [vmem:[%s1479_s0 + $0xe0] sm:$0xff]   ;;  %v1186_v25 = vld [vmem:[%s1479_s0 + $0x28] sm:$0xff]   ;;  %vm172_vm0 = vcmp.lt.s32.totalorder %v171_v33, 784 }
   0xa   :  { %1064 = vmatprep.subr.bf16.mxu0 %v1173_v11  ;;  %v1180_v18 = vld [vmem:[%s1479_s0 + $0x98] sm:$0xff]   ;;  %v1184_v22 = vld [vmem:[%s1479_s0 + $0xa0] sm:$0xff]   ;;  %v1187_v26 = vld [vmem:[%s1479_s0 + $0xe8] sm:$0xff]  }
   0xb   :  { %1085 = vmatpush3.bf16.msra.mxu1 %v1172_v10  ;;  %v1188_v27 = vld [vmem:[%s1479_s0 + $0xa8] sm:$0xff]   ;;  %v1189_v29 = vld [vmem:[%s1479_s0 + $0x70] sm:$0xff]   ;;  %v1193_v34 = vld [vmem:[%s1479_s0 + $0x78] sm:$0xff]  }
   0xc   :  { %1086 = vmatprep.subr.bf16.mxu1 %v1175_v13  ;;  %v1190_v30 = vld [vmem:[%s1479_s0 + $0x30] sm:$0xff]   ;;  %v1194_v35 = vld [vmem:[%s1479_s0 + $0x38] sm:$0xff]   ;;  %v35_v37 = vld [vmem:[%s1483_s4] sm:$0xff]  }
   0xd   :  { %1065 = vmatpush3.bf16.msra.mxu0 %v1174_v12  ;;  %v1191_v31 = vld [vmem:[%s1479_s0 + $0xf0] sm:$0xff]   ;;  %v1195_v36 = vld [vmem:[%s1479_s0 + $0xf8] sm:$0xff]   ;;  %45 = vst [vmem:[#allocation7] sm:$0xff] %v35_v37   ;;  %v1200_v41 = vld [vmem:[%s1479_s0 + $0x140] sm:$0xff]  }
   0xe   :  { %1066 = vmatprep.subr.bf16.mxu0 %v1177_v15  ;;  %v1192_v32 = vld [vmem:[%s1479_s0 + $0xb0] sm:$0xff]   ;;  %v951_v38 = vld [vmem:[%s1483_s4 + $0x18] sm:$0xf]  ;;  %v1201_v43 = vld [vmem:[%s1483_s4 + $0x8] sm:$0xff]  }
   0xf   :  { %1087 = vmatpush3.bf16.msra.mxu1 %v1176_v14  ;;  %v167_v39 = vunpack.c.l.bf16 %v951_v38  ;;  %v1199_v40 = vld [vmem:[%s1479_s0 + $0xb8] sm:$0xff]   ;;  %v214_v44 = vld [vmem:[#allocation7 + $0x24] sm:$0xff]  ;;  %v1202_v49 = vld [vmem:[%s1479_s0 + $0x100] sm:$0xff]  }
  0x10   :  { %1088 = vmatprep.subr.bf16.mxu1 %v1179_v17  ;;  %v955_v47 = vcombine.low %v1201_v43, %v214_v44  ;;  %v956_v48 = vcombine.high %v1201_v43, %v214_v44  ;;  %v1203_v52 = vld [vmem:[%s1479_s0 + $0x148] sm:$0xff]   ;;  %v1205_v54 = vld [vmem:[%s1479_s0 + $0x150] sm:$0xff]   ;;  %v1207_v56 = vld [vmem:[%s1479_s0 + $0x158] sm:$0xff]  }
  0x11   :  { %1067 = vmatpush3.bf16.msra.mxu0 %v1178_v16  ;;  %v173_v42 = vsel %vm172_vm0, %v167_v39, %v1268_v1  ;;  %v1204_v53 = vld [vmem:[%s1479_s0 + $0x108] sm:$0xff]   ;;  %v1206_v55 = vld [vmem:[%s1479_s0 + $0x110] sm:$0xff]   ;;  %v1217_v57 = vld [vmem:[%s1479_s0 + $0x180] sm:$0xff]  }
  0x12   :  { %1068 = vmatprep.subr.bf16.mxu0 %v1181_v19  ;;  %v1036_v45 = vpack.c.bf16 %v1268_v1, %v173_v42  ;;  %727 = vmatprep.mubr.bf16.mxu1 %v956_v48  ;;  %v1218_v58 = vld [vmem:[%s1483_s4 + $0x10] sm:$0xff]   ;;  %v1208_v60 = vld [vmem:[%s1479_s0 + $0x118] sm:$0xff]   ;;  %v1209_v62 = vld [vmem:[%s1479_s0 + $0x160] sm:$0xff]  }
  0x13   :  { %1089 = vmatpush3.bf16.msra.mxu1 %v1180_v18  ;;  %v215_v59 = vld [vmem:[#allocation7 + $0x2c] sm:$0xff]  ;;  %v1210_v0 = vld [vmem:[%s1479_s0 + $0x120] sm:$0xff]   ;;  %v1211_v1 = vld [vmem:[%s1479_s0 + $0x168] sm:$0xff]  }
  0x14   :  { %1090 = vmatprep.subr.bf16.mxu1 %v1183_v21  ;;  %1037 = vst [vmem:[#allocation7 + $0x18] sm:$0xff] %v1036_v45   ;;  %v1198_v51 = vld [vmem:[#allocation7 + $0x4] ss:$28 sps:$4 sm:$0xff]   ;;  %v958_v63 = vcombine.high %v1218_v58, %v215_v59  ;;  %v1213_v3 = vld [vmem:[%s1479_s0 + $0x170] sm:$0xff]   ;;  %v1215_v5 = vld [vmem:[%s1479_s0 + $0x178] sm:$0xff]   ;;  %v957_v7 = vcombine.low %v1218_v58, %v215_v59 }
  0x15   :  { %1069 = vmatpush3.bf16.msra.mxu0 %v1182_v20  ;;  %686 = vmatprep.mubr.bf16.mxu0 %v1198_v51  ;;  %v1212_v2 = vld [vmem:[%s1479_s0 + $0x128] sm:$0xff]   ;;  %v1214_v4 = vld [vmem:[%s1479_s0 + $0x130] sm:$0xff]   ;;  %v1216_v6 = vld [vmem:[%s1479_s0 + $0x138] sm:$0xff]  }
  0x16   :  { %1070 = vmatprep.subr.bf16.mxu0 %v1185_v24  ;;  %v1220_v8 = vld [vmem:[%s1481_s2] sm:$0xff]   ;;  %v1221_v9 = vld [vmem:[%s1481_s2 + $0x8] sm:$0xff]   ;;  %v1222_v10 = vld [vmem:[%s1481_s2 + $0x10] sm:$0xff]  }
  0x17   :  { %1091 = vmatpush3.bf16.msra.mxu1 %v1184_v22  ;;  %v1223_v11 = vld [vmem:[%s1481_s2 + $0x18] sm:$0xff]   ;;  %v1224_v12 = vld [vmem:[%s1481_s2 + $0x20] sm:$0xff]   ;;  %v1225_v13 = vld [vmem:[%s1481_s2 + $0x28] sm:$0xff]  }
  0x18   :  { %1092 = vmatprep.subr.bf16.mxu1 %v1187_v26  ;;  %v1226_v14 = vld [vmem:[%s1481_s2 + $0x30] sm:$0xff]   ;;  %v1227_v15 = vld [vmem:[%s1481_s2 + $0x38] sm:$0xff]   ;;  %v952_v23 = vld [vmem:[%s1480_s1] ss:$0 sm:$0xff] }
  0x19   :  { %1071 = vmatpush3.bf16.msra.mxu0 %v1186_v25 }
  0x1a   :  { %1072 = vmatprep.subr.bf16.mxu0 %v1189_v29 }
  0x1b   :  { %1093 = vmatpush3.bf16.msra.mxu1 %v1188_v27  ;;  %v1196_v50 = vld [vmem:[#allocation7] ss:$28 sps:$4 sm:$0xff]   ;;  %v1219_v61 = vld [vmem:[#allocation7 + $0x18] ss:$28 sps:$4 sm:$0xff]  }
  0x1c   :  { %1094 = vmatprep.subr.bf16.mxu1 %v1191_v31 }
  0x1d   :  { %1073 = vmatpush3.bf16.msra.mxu0 %v1190_v30 }
  0x1e   :  { %1074 = vmatprep.subr.bf16.mxu0 %v1193_v34 }
  0x1f   :  { %1095 = vmatpush3.bf16.msra.mxu1 %v1192_v32 }
  0x20   :  { %1096 = vmatprep.subr.bf16.mxu1 %v1195_v36 }
  0x21   :  { %1075 = vmatpush3.bf16.msra.mxu0 %v1194_v35 }
  0x22   :  { %1104 = vmatprep.subr.bf16.mxu0 %v1200_v41 }
  0x23   :  { %1097 = vmatpush3.bf16.msra.mxu1 %v1199_v40 }
  0x24   :  { %1137 = vmatprep.subr.bf16.mxu1 %v1228_v46  ;;  %687 = vmatmul.mubr.bf16.vlgmr.msra.gmra.mrb[0].mxu0 %v1196_v50  ;;  %v1010_v50 = vld [vmem:[%s1482_s3] ss:$0 sm:$0xff] }
  0x25   :  { %1105 = vmatpush3.bf16.msra.mxu0 %v1202_v49  ;;  %768 = vmatprep.mubr.bf16.mxu0 %v958_v63 }
  0x26   :  { %728 = vmatmul.mubr.bf16.vlgmr.msra.gmra.mrb[0].mxu1 %v955_v47  ;;  %1106 = vmatprep.subr.bf16.mxu0 %v1203_v52 }
  0x27   :  { %1139 = vmatprep.mubr.msk.bf16.mxu1 %vm1229_vm1, %v1228_v46  ;;  %1138 = vmatpush3.bf16.msra.mxu1 %v1217_v57 }
  0x28   :  { %1143 = vmatprep.subr.bf16.mxu1 %v1228_v46 }
  0x29   :  { %1107 = vmatpush3.bf16.msra.mxu0 %v1204_v53 }
  0x2a   :  { %1108 = vmatprep.subr.bf16.mxu0 %v1205_v54 }
  0x2d   :  { %1109 = vmatpush3.bf16.msra.mxu0 %v1206_v55 }
  0x2e   :  { %1110 = vmatprep.subr.bf16.mxu0 %v1207_v56  ;;  %1140 = vmatmul.mubr.msk.bf16.vlgmr.msra.gmra.mrb[4].mxu1 %vm650_vm2, %v1219_v61 }
  0x2f   :  { %1159 = vmatprep.mubr.msk.bf16.mxu1 %vm1229_vm1, %v1228_v46  ;;  %1144 = vmatpush3.bf16.msra.mxu1 %v1220_v8 }
  0x30   :  { %1145 = vmatprep.subr.bf16.mxu1 %v1228_v46 }
  0x31   :  { %1111 = vmatpush3.bf16.msra.mxu0 %v1208_v60 }
  0x32   :  { %1112 = vmatprep.subr.bf16.mxu0 %v1209_v62 }
  0x33   :  { %1146 = vmatpush3.bf16.msra.mxu1 %v1221_v9 }
  0x34   :  { %1147 = vmatprep.subr.bf16.mxu1 %v1228_v46 }
  0x35   :  { %1113 = vmatpush3.bf16.msra.mxu0 %v1210_v0 }
  0x36   :  { %1114 = vmatprep.subr.bf16.mxu0 %v1211_v1 }
  0x37   :  { %1148 = vmatpush3.bf16.msra.mxu1 %v1222_v10 }
  0x38   :  { %1149 = vmatprep.subr.bf16.mxu1 %v1228_v46 }
  0x39   :  { %1115 = vmatpush3.bf16.msra.mxu0 %v1212_v2 }
  0x3a   :  { %1116 = vmatprep.subr.bf16.mxu0 %v1213_v3 }
  0x3b   :  { %1150 = vmatpush3.bf16.msra.mxu1 %v1223_v11 }
  0x3c   :  { %1151 = vmatprep.subr.bf16.mxu1 %v1228_v46 }
  0x3d   :  { %1117 = vmatpush3.bf16.msra.mxu0 %v1214_v4 }
  0x3e   :  { %1118 = vmatprep.subr.bf16.mxu0 %v1215_v5 }
  0x3f   :  { %1152 = vmatpush3.bf16.msra.mxu1 %v1224_v12 }
  0x40   :  { %1153 = vmatprep.subr.bf16.mxu1 %v1228_v46 }
  0x41   :  { %1119 = vmatpush3.bf16.msra.mxu0 %v1216_v6 }
  0x43   :  { %1154 = vmatpush3.bf16.msra.mxu1 %v1225_v13 }
  0x44   :  { %769 = vmatmul.mubr.bf16.vlgmr.msra.gmra.mrb[4].mxu0 %v957_v7  ;;  %1155 = vmatprep.subr.bf16.mxu1 %v1228_v46 }
  0x47   :  { %1156 = vmatpush3.bf16.msra.mxu1 %v1226_v14 }
  0x48   :  { %1157 = vmatprep.subr.bf16.mxu1 %v1228_v46 }
  0x4b   :  { %1158 = vmatpush3.bf16.msra.mxu1 %v1227_v15 }
  0xf7   :  { %v1076_v22 = vpop.f32.mrb[0].mxu0 }
  0xf8   :  { %v1077_v24 = vpop.f32.mrb[1].mxu0 }
  0xf9   :  { %v1098_v16 = vpop.f32.mrb[0].mxu1  ;;  %v1078_v25 = vadd.f32 %v1077_v24, %v1076_v22  ;;  %v1079_v26 = vpop.f32.mrb[2].mxu0 }
  0xfa   :  { %v1099_v17 = vpop.f32.mrb[1].mxu1  ;;  %v1080_v27 = vpop.f32.mrb[3].mxu0 }
  0xfb   :  { %v1100_v18 = vadd.f32 %v1099_v17, %v1098_v16  ;;  %v1101_v19 = vpop.f32.mrb[2].mxu1  ;;  %v689_v28 = vadd.f32 %v1078_v25, %v952_v23  ;;  %v1081_v29 = vadd.f32 %v1080_v27, %v1079_v26 }
  0xfc   :  { %v1102_v20 = vpop.f32.mrb[3].mxu1 }
  0xfd   :  { %v1103_v21 = vadd.f32 %v1102_v20, %v1101_v19  ;;  %v692_v30 = vadd.f32 %v1081_v29, %v952_v23  ;;  %v730_v31 = vadd.f32 %v1100_v18, %v689_v28 }
  0xff   :  { %v733_v32 = vadd.f32 %v1103_v21, %v692_v30 }
 0x101   :  { %v811_v33 = vpop.f32.mrb[4].mxu1 }
 0x102   :  { %v1141_v34 = vpop.f32.mrb[5].mxu1 }
 0x103   :  { %v814_v35 = vpop.f32.mrb[6].mxu1 }
 0x104   :  { %v1142_v36 = vpop.f32.mrb[7].mxu1 }
 0x117   :  { %v1120_v37 = vpop.f32.mrb[4].mxu0 }
 0x118   :  { %v1121_v38 = vpop.f32.mrb[5].mxu0 }
 0x119   :  { %v1122_v39 = vadd.f32 %v1121_v38, %v1120_v37  ;;  %v1123_v40 = vpop.f32.mrb[6].mxu0 }
 0x11a   :  { %v1124_v41 = vpop.f32.mrb[7].mxu0 }
 0x11b   :  { %v771_v42 = vadd.f32 %v1122_v39, %v730_v31  ;;  %v1125_v43 = vadd.f32 %v1124_v41, %v1123_v40 }
 0x11d   :  { %v812_v44 = vadd.f32 %v811_v33, %v771_v42  ;;  %v774_v45 = vadd.f32 %v1125_v43, %v733_v32 }
 0x11f   :  { %v815_v46 = vadd.f32 %v814_v35, %v774_v45  ;;  %v818_v47 = vmax.f32 %v812_v44, 0.0 }
 0x121   :  { %v819_v48 = vmax.f32 %v815_v46, 0.0 }
 0x123   :  { %v820_v49 = vpack.c.bf16 %v819_v48, %v818_v47 }
 0x125   :  { %1160 = vmatmul.mubr.bf16.vlgmr.msra.gmra.mrb[8].mxu1 %v820_v49 }
 0x1f8   :  { %v925_v51 = vpop.f32.mrb[8].mxu1 }
 0x1f9   :  { %v1161_v52 = vpop.f32.mrb[9].mxu1  ;;  %v926_v54 = vadd.f32 %v1010_v50, %v925_v51 }
 0x1fa   :  { %v928_v53 = vpop.f32.mrb[10].mxu1 }
 0x1fb   :  { %v929_v55 = vadd.f32 %v1010_v50, %v928_v53  ;;  %v1162_v56 = vpop.f32.mrb[11].mxu1 }
 0x1fd   :  { %v1056_v57 = vpack.c.bf16 %v929_v55, %v926_v54 }
 0x1ff   :  { %1057 = vst [vmem:[%s1485_s6] sm:$0xff] %v1056_v57  }

</bundles_post_ra>
